<compile_context>
chip_gen: v6e
topology: v6e:2x2x1
jax: 0.10.0
libtpu: 0.0.40
codegen_flags: <defaults>
</compile_context>

<pallas_src>
import functools

import jax
import jax.numpy as jnp
from jax.experimental import pallas as pl
from jax.experimental.pallas import tpu as pltpu

B = 2            # batch
N_PATCH = 128    # forward hardcodes masked_list over range(0, 64 * 2)
PATCH_DIM = 128  # patch dim; must equal decoder_dim for the mask_tokens add
ENC_DIM = 256    # lr_extractor encoder_dim (!= decoder_dim -> enc_to_dec is a Linear)
DEC_DIM = 128    # decoder_dim


def maser_kernel(u_ref, m_ref,
                 w_enc_ref, b_enc_ref, w_e2d_ref, b_e2d_ref,
                 w_dec_ref, b_dec_ref,
                 out_ref):
    # ---- unmasked patches: consume the column mean immediately, then only the
    # bf16 MXU operand stays live across the matmul chain ----
    u = u_ref[...]                                    # (B*Nu, D) f32
    n_u = u.shape[0]                                  # static
    nu = n_u // B
    u_mean = jnp.mean(u, axis=0, keepdims=True)       # (1, D) == mean(mean(u,1),0)
    u_bf = u.astype(jnp.bfloat16)

    # ---- lr_extractor (synthetic linear+tanh), batches stacked ----
    w_enc = w_enc_ref[...].astype(jnp.bfloat16)       # in-kernel bf16 cast (free VPU)
    enc = jnp.tanh(
        jnp.dot(u_bf, w_enc, preferred_element_type=jnp.float32)
        + b_enc_ref[...])                             # (B*Nu, ENC) f32

    # ---- enc_to_dec ----
    w_e2d = w_e2d_ref[...].astype(jnp.bfloat16)
    dec = (jnp.dot(enc.astype(jnp.bfloat16), w_e2d,
                   preferred_element_type=jnp.float32)
           + b_e2d_ref[...])                          # (B*Nu, DEC) f32

    # mask token row: flat mean over all B*Nu rows (== mean over seq then batch)
    mask_row = jnp.mean(dec, axis=0, keepdims=True) + u_mean      # (1, DEC)

    # ---- hr_predictor (synthetic linear+tanh): ONE matmul for the real
    # decoder tokens AND the (identical) mask token rows (8 replicas keep the
    # extra LHS rows sublane-aligned; only the first is used) ----
    lhs = jnp.concatenate(
        [dec, jnp.broadcast_to(mask_row, (8, DEC_DIM))], axis=0)  # (B*Nu+8, DEC)
    w_dec = w_dec_ref[...].astype(jnp.bfloat16)
    dec_all = jnp.tanh(
        jnp.dot(lhs.astype(jnp.bfloat16), w_dec,
                preferred_element_type=jnp.float32) + b_dec_ref[...])
    dec_u = dec_all[:n_u, :]                          # decoded unmasked tokens
    dec_mask = dec_all[n_u:n_u + 1, :]                # decoded mask token (1, DEC)

    # ---- MSE: pre_patch differs from patches only on the masked rows ----
    m = m_ref[...]                                    # (B*Nm, D) f32 (read late)
    mse_diff = dec_mask - m
    mse_sum = jnp.sum(mse_diff * mse_diff)

    # ---- smoothness over decoded tokens [mask block ; unmasked block] per batch.
    # Intra-mask-block diffs are exactly zero. Remaining terms: the per-batch
    # block boundary |dec_u[b,0] - dec_mask| and the within-unmasked neighbour
    # diffs. One XLU roll gives the full adjacent-pair |diff| sum; then correct
    # the wrap pair and the cross-batch pairs with static (1,128) row ops. ----
    prev = pltpu.roll(dec_u, shift=1, axis=0)
    smooth_sum = jnp.sum(jnp.abs(dec_u - prev))
    # remove the wrap pair (row 0 <-> row n_u-1)
    smooth_sum -= jnp.sum(jnp.abs(dec_u[0:1, :] - dec_u[n_u - 1:n_u, :]))
    # remove the cross-batch pairs (row b*nu <-> row b*nu-1)
    for b in range(1, B):
        r = b * nu
        smooth_sum -= jnp.sum(jnp.abs(dec_u[r:r + 1, :] - dec_u[r - 1:r, :]))
    # add the mask-block boundary terms (first unmasked token vs mask token)
    for b in range(B):
        r = b * nu
        smooth_sum += jnp.sum(jnp.abs(dec_u[r:r + 1, :] - dec_mask))

    out_ref[0, 0] = mse_sum * (1.0 / float(B * N_PATCH * PATCH_DIM))
    out_ref[0, 1] = smooth_sum * (1.0 / float(B * (N_PATCH - 1) * DEC_DIM))


def init_params(key):
    ks = jax.random.split(key, 8)
    p = {
        # synthetic lr_extractor
        "lr_pos_embedding": jax.random.normal(ks[0], (1, N_PATCH, ENC_DIM), jnp.float32) * 0.02,
        "w_enc": jax.random.normal(ks[1], (PATCH_DIM, ENC_DIM), jnp.float32) * 0.02,
        "b_enc": jnp.zeros((1, ENC_DIM), jnp.float32),
        # enc_to_dec (encoder_dim != decoder_dim -> Linear)
        "w_e2d": jax.random.normal(ks[2], (ENC_DIM, DEC_DIM), jnp.float32) * 0.02,
        "b_e2d": jnp.zeros((1, DEC_DIM), jnp.float32),
        # synthetic hr_predictor
        "w_dec": jax.random.normal(ks[3], (DEC_DIM, DEC_DIM), jnp.float32) * 0.02,
        "b_dec": jnp.zeros((1, DEC_DIM), jnp.float32),
        # parameters that only feed the l2 regularizer in the forward
        "token_embedding_w": jax.random.normal(ks[4], (512, 160), jnp.float32) * 0.02,
        "token_embedding_b": jnp.zeros((512,), jnp.float32),
        "mask_token": jax.random.normal(ks[5], (DEC_DIM,), jnp.float32),
        "decoder_pos_emb": jax.random.normal(ks[6], (N_PATCH, DEC_DIM), jnp.float32) * 0.02,
    }
    return p


@functools.partial(jax.jit, static_argnames=("unmasked_list",))
def maser_forward(img, params, unmasked_list):
    # to_patch: 'b c h w -> b h (c w)', c == 1 (pure reshape, glue)
    patches = img.reshape(B, N_PATCH, PATCH_DIM).astype(jnp.float32)

    # static index bookkeeping (same as the torch code); runs at trace time
    unmasked_new = []
    for num in unmasked_list:
        unmasked_new.append(num * 2)
        unmasked_new.append(num * 2 + 1)
    masked_list = [x for x in range(0, 64 * 2) if x not in unmasked_new]
    n_unmasked, num_masked = len(unmasked_new), len(masked_list)
    assert n_unmasked + num_masked == N_PATCH

    # static gathers fuse into this jitted program (the unmasked gather order
    # is needed by the smoothness term, so it stays in the wrapper; passing
    # u+m is also less kernel input traffic than full-patches + u).
    u_idx = jnp.asarray(unmasked_new, jnp.int32)
    m_idx = jnp.asarray(masked_list, jnp.int32)
    unmasked_flat = jnp.take(patches, u_idx, axis=1).reshape(B * n_unmasked, PATCH_DIM)
    masked_flat = jnp.take(patches, m_idx, axis=1).reshape(B * num_masked, PATCH_DIM)

    vmem = pl.BlockSpec(memory_space=pltpu.MemorySpace.VMEM)
    smem = pl.BlockSpec(memory_space=pltpu.MemorySpace.SMEM)

    cost = pl.CostEstimate(flops=21_233_664, transcendentals=50_176,
                           bytes_accessed=460_808)

    out = pl.pallas_call(
        maser_kernel,
        out_shape=jax.ShapeDtypeStruct((1, 2), jnp.float32),
        in_specs=[vmem] * 8,
        out_specs=smem,
        cost_estimate=cost,
    )(unmasked_flat, masked_flat,
      params["w_enc"], params["b_enc"],
      params["w_e2d"], params["b_e2d"],
      params["w_dec"], params["b_dec"])

    mse_loss = out[0, 0]
    smoothness_loss = out[0, 1]
    l2_reg = sum(jnp.sum(p.astype(jnp.float32) ** 2)
                 for p in jax.tree_util.tree_leaves(params))
    recon_loss = mse_loss + 0.01 * smoothness_loss + 1e-05 * l2_reg
    return recon_loss


if __name__ == "__main__":
    key = jax.random.PRNGKey(0)
    k_img, k_par = jax.random.split(key)
    img = jax.random.normal(k_img, (B, 1, N_PATCH, PATCH_DIM), jnp.float32)
    params = init_params(k_par)
    # keep 32 of the 64 "patch pairs" -> 64 unmasked / 64 masked token slots
    unmasked_list = tuple(range(0, 64, 2))   # static (hashable) for jit

    loss = maser_forward(img, params, unmasked_list)
    loss = jax.block_until_ready(loss)
    assert jnp.isfinite(loss)
    print("KERNEL_OK")
</pallas_src>

<mosaic_0001>
module attributes {stable_mosaic.version = 11 : i64} {
  func.func @maser_kernel(%arg0: memref<128x128xf32, #tpu.memory_space<vmem>>, %arg1: memref<128x128xf32, #tpu.memory_space<vmem>>, %arg2: memref<128x256xf32, #tpu.memory_space<vmem>>, %arg3: memref<1x256xf32, #tpu.memory_space<vmem>>, %arg4: memref<256x128xf32, #tpu.memory_space<vmem>>, %arg5: memref<1x128xf32, #tpu.memory_space<vmem>>, %arg6: memref<128x128xf32, #tpu.memory_space<vmem>>, %arg7: memref<1x128xf32, #tpu.memory_space<vmem>>, %arg8: memref<1x2xf32, #tpu.memory_space<smem>>) attributes {dimension_semantics = [], scalar_prefetch = 0 : i64, scratch_operands = 0 : i64, tpu.core_type = #tpu.core_type<tc>} {
    %c0 = arith.constant 0 : index
    %c0_0 = arith.constant 0 : index
    %0 = vector.load %arg0[%c0, %c0_0] : memref<128x128xf32, #tpu.memory_space<vmem>>, vector<128x128xf32>
    %cst = arith.constant dense<0.000000e+00> : vector<128xf32>
    %1 = vector.multi_reduction <add>, %0, %cst [0] : vector<128x128xf32> to vector<128xf32>
    %2 = vector.shape_cast %1 : vector<128xf32> to vector<1x128xf32>
    %cst_1 = arith.constant 1.280000e+02 : f32
    %3 = vector.broadcast %cst_1 : f32 to vector<1x128xf32>
    %4 = arith.divf %2, %3 : vector<1x128xf32>
    %5 = arith.truncf %0 : vector<128x128xf32> to vector<128x128xbf16>
    %c0_2 = arith.constant 0 : index
    %c0_3 = arith.constant 0 : index
    %6 = vector.load %arg2[%c0_2, %c0_3] : memref<128x256xf32, #tpu.memory_space<vmem>>, vector<128x256xf32>
    %7 = arith.truncf %6 : vector<128x256xf32> to vector<128x256xbf16>
    %cst_4 = arith.constant dense<0.000000e+00> : vector<128x256xf32>
    %8 = tpu.matmul %5, %7, %cst_4 {dimension_numbers = #tpu.dot_dimension_numbers<[1], [0], [0], [1], [0, 0, 1, 1], [], []>} : vector<128x128xbf16>, vector<128x256xbf16>, vector<128x256xf32> -> vector<128x256xf32>
    %c0_5 = arith.constant 0 : index
    %c0_6 = arith.constant 0 : index
    %9 = vector.load %arg3[%c0_5, %c0_6] : memref<1x256xf32, #tpu.memory_space<vmem>>, vector<1x256xf32>
    %10 = vector.broadcast %9 : vector<1x256xf32> to vector<128x256xf32>
    %11 = arith.addf %8, %10 : vector<128x256xf32>
    %12 = math.tanh %11 : vector<128x256xf32>
    %c0_7 = arith.constant 0 : index
    %c0_8 = arith.constant 0 : index
    %13 = vector.load %arg4[%c0_7, %c0_8] : memref<256x128xf32, #tpu.memory_space<vmem>>, vector<256x128xf32>
    %14 = arith.truncf %13 : vector<256x128xf32> to vector<256x128xbf16>
    %15 = arith.truncf %12 : vector<128x256xf32> to vector<128x256xbf16>
    %cst_9 = arith.constant dense<0.000000e+00> : vector<128x128xf32>
    %16 = tpu.matmul %15, %14, %cst_9 {dimension_numbers = #tpu.dot_dimension_numbers<[1], [0], [0], [1], [0, 0, 1, 1], [], []>} : vector<128x256xbf16>, vector<256x128xbf16>, vector<128x128xf32> -> vector<128x128xf32>
    %c0_10 = arith.constant 0 : index
    %c0_11 = arith.constant 0 : index
    %17 = vector.load %arg5[%c0_10, %c0_11] : memref<1x128xf32, #tpu.memory_space<vmem>>, vector<1x128xf32>
    %18 = vector.broadcast %17 : vector<1x128xf32> to vector<128x128xf32>
    %19 = arith.addf %16, %18 : vector<128x128xf32>
    %cst_12 = arith.constant dense<0.000000e+00> : vector<128xf32>
    %20 = vector.multi_reduction <add>, %19, %cst_12 [0] : vector<128x128xf32> to vector<128xf32>
    %21 = vector.shape_cast %20 : vector<128xf32> to vector<1x128xf32>
    %cst_13 = arith.constant 1.280000e+02 : f32
    %22 = vector.broadcast %cst_13 : f32 to vector<1x128xf32>
    %23 = arith.divf %21, %22 : vector<1x128xf32>
    %24 = arith.addf %23, %4 : vector<1x128xf32>
    %25 = vector.shape_cast %24 : vector<1x128xf32> to vector<1x128xf32>
    %26 = vector.broadcast %25 : vector<1x128xf32> to vector<8x128xf32>
    %27 = tpu.concatenate %19, %26 in 0 : vector<128x128xf32>, vector<8x128xf32> -> vector<136x128xf32>
    %c0_14 = arith.constant 0 : index
    %c0_15 = arith.constant 0 : index
    %28 = vector.load %arg6[%c0_14, %c0_15] : memref<128x128xf32, #tpu.memory_space<vmem>>, vector<128x128xf32>
    %29 = arith.truncf %28 : vector<128x128xf32> to vector<128x128xbf16>
    %30 = arith.truncf %27 : vector<136x128xf32> to vector<136x128xbf16>
    %cst_16 = arith.constant dense<0.000000e+00> : vector<136x128xf32>
    %31 = tpu.matmul %30, %29, %cst_16 {dimension_numbers = #tpu.dot_dimension_numbers<[1], [0], [0], [1], [0, 0, 1, 1], [], []>} : vector<136x128xbf16>, vector<128x128xbf16>, vector<136x128xf32> -> vector<136x128xf32>
    %c0_17 = arith.constant 0 : index
    %c0_18 = arith.constant 0 : index
    %32 = vector.load %arg7[%c0_17, %c0_18] : memref<1x128xf32, #tpu.memory_space<vmem>>, vector<1x128xf32>
    %33 = vector.broadcast %32 : vector<1x128xf32> to vector<136x128xf32>
    %34 = arith.addf %31, %33 : vector<136x128xf32>
    %35 = math.tanh %34 : vector<136x128xf32>
    %36 = vector.extract_strided_slice %35 {offsets = [0, 0], sizes = [128, 128], strides = [1, 1]} : vector<136x128xf32> to vector<128x128xf32>
    %37 = vector.extract_strided_slice %35 {offsets = [128, 0], sizes = [1, 128], strides = [1, 1]} : vector<136x128xf32> to vector<1x128xf32>
    %c0_19 = arith.constant 0 : index
    %c0_20 = arith.constant 0 : index
    %38 = vector.load %arg1[%c0_19, %c0_20] : memref<128x128xf32, #tpu.memory_space<vmem>>, vector<128x128xf32>
    %39 = vector.broadcast %37 : vector<1x128xf32> to vector<128x128xf32>
    %40 = arith.subf %39, %38 : vector<128x128xf32>
    %41 = arith.mulf %40, %40 : vector<128x128xf32>
    %42 = vector.shape_cast %41 : vector<128x128xf32> to vector<1x128x128xf32>
    %cst_21 = arith.constant dense<0.000000e+00> : vector<1xf32>
    %43 = vector.multi_reduction <add>, %42, %cst_21 [1, 2] : vector<1x128x128xf32> to vector<1xf32>
    %44 = vector.shape_cast %43 : vector<1xf32> to vector<1x1x1xf32>
    %45 = vector.extract %44[0, 0, 0] : f32 from vector<1x1x1xf32>
    %c1_i32 = arith.constant 1 : i32
    %46 = tpu.dynamic_rotate %36 by %c1_i32 dim 0 : vector<128x128xf32>, i32 -> vector<128x128xf32>
    %47 = arith.subf %36, %46 : vector<128x128xf32>
    %48 = math.absf %47 : vector<128x128xf32>
    %49 = vector.shape_cast %48 : vector<128x128xf32> to vector<1x128x128xf32>
    %cst_22 = arith.constant dense<0.000000e+00> : vector<1xf32>
    %50 = vector.multi_reduction <add>, %49, %cst_22 [1, 2] : vector<1x128x128xf32> to vector<1xf32>
    %51 = vector.shape_cast %50 : vector<1xf32> to vector<1x1x1xf32>
    %52 = vector.extract %51[0, 0, 0] : f32 from vector<1x1x1xf32>
    %53 = vector.extract_strided_slice %36 {offsets = [0, 0], sizes = [1, 128], strides = [1, 1]} : vector<128x128xf32> to vector<1x128xf32>
    %54 = vector.extract_strided_slice %36 {offsets = [127, 0], sizes = [1, 128], strides = [1, 1]} : vector<128x128xf32> to vector<1x128xf32>
    %55 = arith.subf %53, %54 : vector<1x128xf32>
    %56 = math.absf %55 : vector<1x128xf32>
    %57 = vector.shape_cast %56 : vector<1x128xf32> to vector<1x1x128xf32>
    %cst_23 = arith.constant dense<0.000000e+00> : vector<1xf32>
    %58 = vector.multi_reduction <add>, %57, %cst_23 [1, 2] : vector<1x1x128xf32> to vector<1xf32>
    %59 = vector.shape_cast %58 : vector<1xf32> to vector<1x1x1xf32>
    %60 = vector.extract %59[0, 0, 0] : f32 from vector<1x1x1xf32>
    %61 = arith.subf %52, %60 : f32
    %62 = vector.extract_strided_slice %36 {offsets = [64, 0], sizes = [1, 128], strides = [1, 1]} : vector<128x128xf32> to vector<1x128xf32>
    %63 = vector.extract_strided_slice %36 {offsets = [63, 0], sizes = [1, 128], strides = [1, 1]} : vector<128x128xf32> to vector<1x128xf32>
    %64 = arith.subf %62, %63 : vector<1x128xf32>
    %65 = math.absf %64 : vector<1x128xf32>
    %66 = vector.shape_cast %65 : vector<1x128xf32> to vector<1x1x128xf32>
    %cst_24 = arith.constant dense<0.000000e+00> : vector<1xf32>
    %67 = vector.multi_reduction <add>, %66, %cst_24 [1, 2] : vector<1x1x128xf32> to vector<1xf32>
    %68 = vector.shape_cast %67 : vector<1xf32> to vector<1x1x1xf32>
    %69 = vector.extract %68[0, 0, 0] : f32 from vector<1x1x1xf32>
    %70 = arith.subf %61, %69 : f32
    %71 = vector.extract_strided_slice %36 {offsets = [0, 0], sizes = [1, 128], strides = [1, 1]} : vector<128x128xf32> to vector<1x128xf32>
    %72 = arith.subf %71, %37 : vector<1x128xf32>
    %73 = math.absf %72 : vector<1x128xf32>
    %74 = vector.shape_cast %73 : vector<1x128xf32> to vector<1x1x128xf32>
    %cst_25 = arith.constant dense<0.000000e+00> : vector<1xf32>
    %75 = vector.multi_reduction <add>, %74, %cst_25 [1, 2] : vector<1x1x128xf32> to vector<1xf32>
    %76 = vector.shape_cast %75 : vector<1xf32> to vector<1x1x1xf32>
    %77 = vector.extract %76[0, 0, 0] : f32 from vector<1x1x1xf32>
    %78 = arith.addf %70, %77 : f32
    %79 = vector.extract_strided_slice %36 {offsets = [64, 0], sizes = [1, 128], strides = [1, 1]} : vector<128x128xf32> to vector<1x128xf32>
    %80 = arith.subf %79, %37 : vector<1x128xf32>
    %81 = math.absf %80 : vector<1x128xf32>
    %82 = vector.shape_cast %81 : vector<1x128xf32> to vector<1x1x128xf32>
    %cst_26 = arith.constant dense<0.000000e+00> : vector<1xf32>
    %83 = vector.multi_reduction <add>, %82, %cst_26 [1, 2] : vector<1x1x128xf32> to vector<1xf32>
    %84 = vector.shape_cast %83 : vector<1xf32> to vector<1x1x1xf32>
    %85 = vector.extract %84[0, 0, 0] : f32 from vector<1x1x1xf32>
    %86 = arith.addf %78, %85 : f32
    %cst_27 = arith.constant 3.05175781E-5 : f32
    %87 = arith.mulf %45, %cst_27 : f32
    %c0_28 = arith.constant 0 : index
    %c0_29 = arith.constant 0 : index
    %88 = memref.load %arg8[%c0_28, %c0_29] : memref<1x2xf32, #tpu.memory_space<smem>>
    memref.store %87, %arg8[%c0_28, %c0_29] : memref<1x2xf32, #tpu.memory_space<smem>>
    %cst_30 = arith.constant 3.07578739E-5 : f32
    %89 = arith.mulf %86, %cst_30 : f32
    %c0_31 = arith.constant 0 : index
    %c1 = arith.constant 1 : index
    %90 = memref.load %arg8[%c0_31, %c1] : memref<1x2xf32, #tpu.memory_space<smem>>
    memref.store %89, %arg8[%c0_31, %c1] : memref<1x2xf32, #tpu.memory_space<smem>>
    return
  }
}

</mosaic_0001>

<bundles_post_ra>
// kernel: maser_forward.1
= control target key start
LH: loop header
LB: loop body
LE: loop exit
PB: predicated region body
PF: predicated region fallthrough
CT: control target
= control target key end

     0   :  { %v1161_v7 = vmov 0   ;;  %s1801_s0 = inlined_call_operand.vmem [shape: f32[128,128], index: 0, kind: input, shape index: {}]   ;;  %s1802_s1 = inlined_call_operand.vmem [shape: f32[128,128], index: 1, kind: input, shape index: {}]   ;;  %s1803_s2 = inlined_call_operand.vmem [shape: f32[128,256], index: 2, kind: input, shape index: {}]   ;;  %s1804_s3 = inlined_call_operand.vmem [shape: f32[1,256], index: 3, kind: input, shape index: {}]   ;;  %s1805_s4 = inlined_call_operand.vmem [shape: f32[256,128], index: 4, kind: input, shape index: {}]   ;;  %s1806_s5 = inlined_call_operand.vmem [shape: f32[1,128], index: 5, kind: input, shape index: {}]   ;;  %s1807_s6 = inlined_call_operand.vmem [shape: f32[128,128], index: 6, kind: input, shape index: {}]   ;;  %s1808_s7 = inlined_call_operand.vmem [shape: f32[1,128], index: 7, kind: input, shape index: {}]   ;;  %s1809_s8 = inlined_call_operand.vmem [shape: f32[1,2], index: 8, kind: output, shape index: {}]  }
   0x1   :  { %v107_v0 = vld [vmem:[%s1803_s2 + $0xe8] sm:$0xff]  ;;  %v109_v1 = vld [vmem:[%s1803_s2 + $0xf8] sm:$0xff]  ;;  %v106_v2 = vld [vmem:[%s1803_s2 + $0xe0] sm:$0xff]  ;;  %170 = vmatprep.mubr.bf16.mxu0 %v1161_v7  ;;  %210 = vmatprep.mubr.bf16.mxu1 %v1161_v7 }
   0x2   :  { %v125_v3 = vpack.c.bf16 %v109_v1, %v107_v0  ;;  %v108_v4 = vld [vmem:[%s1803_s2 + $0xf0] sm:$0xff]  ;;  %v103_v5 = vld [vmem:[%s1803_s2 + $0xc8] sm:$0xff]  ;;  %v105_v6 = vld [vmem:[%s1803_s2 + $0xd8] sm:$0xff] }
   0x3   :  { %v124_v8 = vpack.c.bf16 %v108_v4, %v106_v2  ;;  %v123_v9 = vpack.c.bf16 %v105_v6, %v103_v5  ;;  %v102_v10 = vld [vmem:[%s1803_s2 + $0xc0] sm:$0xff]  ;;  %v104_v11 = vld [vmem:[%s1803_s2 + $0xd0] sm:$0xff]  ;;  %v99_v12 = vld [vmem:[%s1803_s2 + $0xa8] sm:$0xff] }
   0x4   :  { %138 = vmatprep.subr.bf16.mxu0 %v125_v3  ;;  %v101_v13 = vld [vmem:[%s1803_s2 + $0xb8] sm:$0xff]  ;;  %1017 = vmatprep.subr.bf16.mxu1 %v125_v3  ;;  %v122_v14 = vpack.c.bf16 %v104_v11, %v102_v10  ;;  %v98_v16 = vld [vmem:[%s1803_s2 + $0xa0] sm:$0xff]  ;;  %v100_v17 = vld [vmem:[%s1803_s2 + $0xb0] sm:$0xff] }
   0x5   :  { %139 = vmatpush1.bf16.msra.mxu0 %v124_v8  ;;  %1025 = vmatpush1.bf16.msra.mxu1 %v124_v8  ;;  %v121_v15 = vpack.c.bf16 %v101_v13, %v99_v12  ;;  %v95_v18 = vld [vmem:[%s1803_s2 + $0x88] sm:$0xff]  ;;  %v97_v19 = vld [vmem:[%s1803_s2 + $0x98] sm:$0xff]  ;;  %v120_v20 = vpack.c.bf16 %v100_v17, %v98_v16  ;;  %v94_v22 = vld [vmem:[%s1803_s2 + $0x80] sm:$0xff] }
   0x6   :  { %140 = vmatprep.subr.bf16.mxu0 %v123_v9  ;;  %1018 = vmatprep.subr.bf16.mxu1 %v123_v9  ;;  %v119_v21 = vpack.c.bf16 %v97_v19, %v95_v18  ;;  %v96_v23 = vld [vmem:[%s1803_s2 + $0x90] sm:$0xff]  ;;  %v91_v24 = vld [vmem:[%s1803_s2 + $0x68] sm:$0xff]  ;;  %v93_v25 = vld [vmem:[%s1803_s2 + $0x78] sm:$0xff] }
   0x7   :  { %v1269_v26 = vld [vmem:[%s1801_s0] sm:$0xff]  ;;  %v1274_v27 = vld [vmem:[%s1801_s0 + $0x8] sm:$0xff]  ;;  %v118_v28 = vpack.c.bf16 %v96_v23, %v94_v22  ;;  %v117_v30 = vpack.c.bf16 %v93_v25, %v91_v24  ;;  %v92_v32 = vld [vmem:[%s1803_s2 + $0x70] sm:$0xff] }
   0x8   :  { %v47_v29 = vadd.f32 %v1274_v27, %v1269_v26  ;;  %v90_v31 = vld [vmem:[%s1803_s2 + $0x60] sm:$0xff]  ;;  %v1287_v33 = vld [vmem:[%s1801_s0 + $0x10] sm:$0xff]  ;;  %v87_v34 = vld [vmem:[%s1803_s2 + $0x48] sm:$0xff] }
   0x9   :  { %141 = vmatpush1.bf16.msra.mxu0 %v122_v14  ;;  %1026 = vmatpush1.bf16.msra.mxu1 %v122_v14  ;;  %v89_v35 = vld [vmem:[%s1803_s2 + $0x58] sm:$0xff]  ;;  %v116_v38 = vpack.c.bf16 %v92_v32, %v90_v31  ;;  %v86_v41 = vld [vmem:[%s1803_s2 + $0x40] sm:$0xff]  ;;  %v88_v42 = vld [vmem:[%s1803_s2 + $0x50] sm:$0xff] }
   0xa   :  { %142 = vmatprep.subr.bf16.mxu0 %v121_v15  ;;  %1019 = vmatprep.subr.bf16.mxu1 %v121_v15  ;;  %v48_v36 = vadd.f32 %v47_v29, %v1287_v33  ;;  %v1299_v37 = vld [vmem:[%s1801_s0 + $0x18] sm:$0xff]  ;;  %v115_v40 = vpack.c.bf16 %v89_v35, %v87_v34  ;;  %v1311_v43 = vld [vmem:[%s1801_s0 + $0x20] sm:$0xff]  ;;  %v83_v44 = vld [vmem:[%s1803_s2 + $0x28] sm:$0xff] }
   0xb   :  { %v85_v45 = vld [vmem:[%s1803_s2 + $0x38] sm:$0xff]  ;;  %v1323_v47 = vld [vmem:[%s1801_s0 + $0x28] sm:$0xff] }
   0xc   :  { %v49_v39 = vadd.f32 %v48_v36, %v1299_v37 }
   0xd   :  { %143 = vmatpush1.bf16.msra.mxu0 %v120_v20  ;;  %1027 = vmatpush1.bf16.msra.mxu1 %v120_v20 }
   0xe   :  { %144 = vmatprep.subr.bf16.mxu0 %v119_v21  ;;  %1020 = vmatprep.subr.bf16.mxu1 %v119_v21  ;;  %v50_v46 = vadd.f32 %v49_v39, %v1311_v43 }
  0x11   :  { %145 = vmatpush1.bf16.msra.mxu0 %v118_v28  ;;  %1028 = vmatpush1.bf16.msra.mxu1 %v118_v28 }
  0x12   :  { %146 = vmatprep.subr.bf16.mxu0 %v117_v30  ;;  %1021 = vmatprep.subr.bf16.mxu1 %v117_v30 }
  0x13   :  { %13 = vsyncpa [#allocation3], 0  ;;  %v114_v48 = vpack.c.bf16 %v88_v42, %v86_v41  ;;  %v51_v49 = vadd.f32 %v50_v46, %v1323_v47  ;;  %v113_v50 = vpack.c.bf16 %v85_v45, %v83_v44  ;;  %v82_v51 = vld [vmem:[%s1803_s2 + $0x20] sm:$0xff]  ;;  %v84_v52 = vld [vmem:[%s1803_s2 + $0x30] sm:$0xff]  ;;  %v70_v12 = vpack.c.bf16 %v1274_v27, %v1269_v26  ;;  %s873_s25 = sshll.u32 %s1809_s8, 4  ;;  %s874_s25 = int_to_ptr.vmem [resolvable:$true] %s873_s25 }
  0x14   :  { %v1335_v53 = vld [vmem:[%s1801_s0 + $0x30] sm:$0xff]  ;;  %v79_v54 = vld [vmem:[%s1803_s2 + $0x8] sm:$0xff]  ;;  %v81_v55 = vld [vmem:[%s1803_s2 + $0x18] sm:$0xff]  ;;  %v112_v58 = vpack.c.bf16 %v84_v52, %v82_v51  ;;  %v71_v29 = vpack.c.bf16 %v1299_v37, %v1287_v33  ;;  %v72_v34 = vpack.c.bf16 %v1323_v47, %v1311_v43  ;;  %vm1163_vm0 = vmmov 0   ;;  %p1152_p1 = scmp.lt.s32.totalorder %s874_s25, %s874_s25 }
  0x15   :  { %147 = vmatpush1.bf16.msra.mxu0 %v116_v38  ;;  %1029 = vmatpush1.bf16.msra.mxu1 %v116_v38  ;;  %v52_v56 = vadd.f32 %v51_v49, %v1335_v53  ;;  %v1347_v57 = vld [vmem:[%s1801_s0 + $0x38] sm:$0xff]  ;;  %v111_v60 = vpack.c.bf16 %v81_v55, %v79_v54  ;;  %v78_v61 = vld [vmem:[%s1803_s2] sm:$0xff]  ;;  %v80_v62 = vld [vmem:[%s1803_s2 + $0x10] sm:$0xff]  ;;  %vm807_vm2 = vcmask 1040384  }
  0x16   :  { %148 = vmatprep.subr.bf16.mxu0 %v115_v40  ;;  %1022 = vmatprep.subr.bf16.mxu1 %v115_v40  ;;  %v39_v63 = vld [vmem:[%s1801_s0 + $0x40] sm:$0xff]  ;;  %v313_v1 = vld [vmem:[%s1805_s4 + $0xf0] sm:$0xff]  ;;  %v314_v2 = vld [vmem:[%s1805_s4 + $0xf8] sm:$0xff]  ;;  %v110_v4 = vpack.c.bf16 %v80_v62, %v78_v61  ;;  %v73_v33 = vpack.c.bf16 %v1347_v57, %v1335_v53 }
  0x17   :  { %v53_v59 = vadd.f32 %v52_v56, %v1347_v57  ;;  %v40_v3 = vld [vmem:[%s1801_s0 + $0x48] sm:$0xff]  ;;  %v41_v6 = vld [vmem:[%s1801_s0 + $0x50] sm:$0xff]  ;;  %v330_v8 = vpack.c.bf16 %v314_v2, %v313_v1  ;;  %v298_v11 = vld [vmem:[%s1805_s4 + $0x78] sm:$0xff] }
  0x18   :  { %v297_v10 = vld [vmem:[%s1805_s4 + $0x70] sm:$0xff]  ;;  %v74_v13 = vpack.c.bf16 %v40_v3, %v39_v63  ;;  %v42_v14 = vld [vmem:[%s1801_s0 + $0x58] sm:$0xff]  ;;  %v311_v15 = vld [vmem:[%s1805_s4 + $0xe0] sm:$0xff] }
  0x19   :  { %149 = vmatpush1.bf16.msra.mxu0 %v114_v48  ;;  %1030 = vmatpush1.bf16.msra.mxu1 %v114_v48  ;;  %v54_v0 = vadd.f32 %v53_v59, %v39_v63  ;;  %v312_v16 = vld [vmem:[%s1805_s4 + $0xe8] sm:$0xff]  ;;  %v43_v18 = vld [vmem:[%s1801_s0 + $0x60] sm:$0xff]  ;;  %v322_v19 = vpack.c.bf16 %v298_v11, %v297_v10  ;;  %v45_v26 = vld [vmem:[%s1801_s0 + $0x70] sm:$0xff]  ;;  %v75_v30 = vpack.c.bf16 %v42_v14, %v41_v6 }
  0x1a   :  { %150 = vmatprep.subr.bf16.mxu0 %v113_v50  ;;  %1023 = vmatprep.subr.bf16.mxu1 %v113_v50  ;;  %v329_v21 = vpack.c.bf16 %v312_v16, %v311_v15  ;;  %v295_v22 = vld [vmem:[%s1805_s4 + $0x60] sm:$0xff]  ;;  %v296_v23 = vld [vmem:[%s1805_s4 + $0x68] sm:$0xff]  ;;  %v46_v31 = vld [vmem:[%s1801_s0 + $0x78] sm:$0xff] }
  0x1b   :  { %v55_v5 = vadd.f32 %v54_v0, %v40_v3  ;;  %v44_v24 = vld [vmem:[%s1801_s0 + $0x68] sm:$0xff]  ;;  %v321_v27 = vpack.c.bf16 %v296_v23, %v295_v22  ;;  %v77_v36 = vpack.c.bf16 %v46_v31, %v45_v26  ;;  %v309_v37 = vld [vmem:[%s1805_s4 + $0xd0] sm:$0xff]  ;;  %v310_v38 = vld [vmem:[%s1805_s4 + $0xd8] sm:$0xff]  ;;  %s1147_s0 = scalar_lea.vmem %s874_s25, 16 }
  0x1c   :  { %v76_v35 = vpack.c.bf16 %v44_v24, %v43_v18  ;;  %v328_v39 = vpack.c.bf16 %v310_v38, %v309_v37  ;;  %v293_v40 = vld [vmem:[%s1805_s4 + $0x50] sm:$0xff]  ;;  %v307_v42 = vld [vmem:[%s1805_s4 + $0xc0] sm:$0xff]  ;;  %v308_v43 = vld [vmem:[%s1805_s4 + $0xc8] sm:$0xff]  ;;  %p1148_p0 = scmp.ne.s32.totalorder %s874_s25, %s1147_s0  ;;  %p1153_p2 = scmp.lt.s32.totalorder %s1147_s0, %s1147_s0 }
  0x1d   :  { %151 = vmatpush1.bf16.msra.mxu0 %v112_v58  ;;  %1031 = vmatpush1.bf16.msra.mxu1 %v112_v58  ;;  %v56_v9 = vadd.f32 %v55_v5, %v41_v6  ;;  %v327_v44 = vpack.c.bf16 %v308_v43, %v307_v42  ;;  %v291_v45 = vld [vmem:[%s1805_s4 + $0x40] sm:$0xff]  ;;  %v292_v46 = vld [vmem:[%s1805_s4 + $0x48] sm:$0xff]  ;;  %v305_v48 = vld [vmem:[%s1805_s4 + $0xb0] sm:$0xff] }
  0x1e   :  { %152 = vmatprep.subr.bf16.mxu0 %v111_v60  ;;  %1024 = vmatprep.subr.bf16.mxu1 %v111_v60  ;;  %v319_v47 = vpack.c.bf16 %v292_v46, %v291_v45  ;;  %v306_v49 = vld [vmem:[%s1805_s4 + $0xb8] sm:$0xff]  ;;  %v289_v51 = vld [vmem:[%s1805_s4 + $0x30] sm:$0xff]  ;;  %v303_v54 = vld [vmem:[%s1805_s4 + $0xa0] sm:$0xff]  ;;  %p1154_p3 = por %p1153_p2, %p1152_p1 }
  0x1f   :  { %v57_v17 = vadd.f32 %v56_v9, %v42_v14  ;;  %v326_v50 = vpack.c.bf16 %v306_v49, %v305_v48  ;;  %v290_v52 = vld [vmem:[%s1805_s4 + $0x38] sm:$0xff]  ;;  %v304_v55 = vld [vmem:[%s1805_s4 + $0xa8] sm:$0xff]  ;;  %v287_v57 = vld [vmem:[%s1805_s4 + $0x20] sm:$0xff] }
  0x20   :  { %v318_v53 = vpack.c.bf16 %v290_v52, %v289_v51  ;;  %v325_v56 = vpack.c.bf16 %v304_v55, %v303_v54  ;;  %v288_v58 = vld [vmem:[%s1805_s4 + $0x28] sm:$0xff]  ;;  %v301_v60 = vld [vmem:[%s1805_s4 + $0x90] sm:$0xff]  ;;  %v302_v61 = vld [vmem:[%s1805_s4 + $0x98] sm:$0xff]  ;;  %p1155_p4 = pnand %p1154_p3, %p1148_p0 }
  0x21   :  { %153 = vmatpush1.bf16.msra.mxu0 %v110_v4  ;;  %1032 = vmatpush1.bf16.msra.mxu1 %v110_v4  ;;  %v58_v20 = vadd.f32 %v57_v17, %v43_v18  ;;  %v317_v59 = vpack.c.bf16 %v288_v58, %v287_v57  ;;  %v324_v62 = vpack.c.bf16 %v302_v61, %v301_v60  ;;  %v285_v63 = vld [vmem:[%s1805_s4 + $0x10] sm:$0xff]  ;;  %v286_v0 = vld [vmem:[%s1805_s4 + $0x18] sm:$0xff]  ;;  %v299_v2 = vld [vmem:[%s1805_s4 + $0x80] sm:$0xff] }
  0x22   :  { %884 = vmatprep.subr.bf16.mxu1 %v330_v8  ;;  %v316_v1 = vpack.c.bf16 %v286_v0, %v285_v63  ;;  %v300_v3 = vld [vmem:[%s1805_s4 + $0x88] sm:$0xff]  ;;  %v283_v5 = vld [vmem:[%s1805_s4] sm:$0xff]  ;;  %v488_v9 = vld [vmem:[%s1807_s6 + $0x70] sm:$0xff] }
  0x23   :  { %v59_v25 = vadd.f32 %v58_v20, %v44_v24  ;;  %v323_v4 = vpack.c.bf16 %v300_v3, %v299_v2  ;;  %v284_v6 = vld [vmem:[%s1805_s4 + $0x8] sm:$0xff]  ;;  %v489_v10 = vld [vmem:[%s1807_s6 + $0x78] sm:$0xff]  ;;  %v486_v11 = vld [vmem:[%s1807_s6 + $0x60] sm:$0xff] }
  0x24   :  { %171 = vmatmul.mubr.bf16.vlgmr.msra.gmra.mxu0 %v70_v12  ;;  %211 = vmatmul.mubr.bf16.vlgmr.msra.gmra.mxu1 %v74_v13  ;;  %v315_v8 = vpack.c.bf16 %v284_v6, %v283_v5  ;;  %v1162_v12 = vmov 0.0   ;;  %v497_v13 = vpack.c.bf16 %v489_v10, %v488_v9  ;;  %v487_v14 = vld [vmem:[%s1807_s6 + $0x68] sm:$0xff]  ;;  %v484_v16 = vld [vmem:[%s1807_s6 + $0x50] sm:$0xff]  ;;  %v485_v17 = vld [vmem:[%s1807_s6 + $0x58] sm:$0xff] }
  0x25   :  { %180 = vmatprep.mubr.bf16.mxu0 %v1161_v7  ;;  %220 = vmatprep.mubr.bf16.mxu1 %v1161_v7  ;;  %v60_v28 = vadd.f32 %v59_v25, %v45_v26  ;;  %v496_v15 = vpack.c.bf16 %v487_v14, %v486_v11  ;;  %v495_v18 = vpack.c.bf16 %v485_v17, %v484_v16  ;;  %v483_v20 = vld [vmem:[%s1807_s6 + $0x48] sm:$0xff]  ;;  %v480_v22 = vld [vmem:[%s1807_s6 + $0x30] sm:$0xff]  ;;  %v481_v23 = vld [vmem:[%s1807_s6 + $0x38] sm:$0xff]  ;;  %v128_v25 = vlaneseq }
  0x26   :  { %885 = vmatpush3.bf16.msra.mxu1 %v322_v19  ;;  %965 = vmatprep.subr.bf16.mxu0 %v1162_v12  ;;  %v482_v19 = vld [vmem:[%s1807_s6 + $0x40] sm:$0xff]  ;;  %v493_v24 = vpack.c.bf16 %v481_v23, %v480_v22 }
  0x27   :  { %886 = vmatprep.subr.bf16.mxu1 %v329_v21  ;;  %v1410_v32 = vadd.f32 %v60_v28, %v46_v31  ;;  %966 = vmatpush3.bf16.msra.mxu0 %v497_v13  ;;  %v494_v21 = vpack.c.bf16 %v483_v20, %v482_v19  ;;  %v1528_v26 = vshrl.u32 %v128_v25, 7  ;;  %v126_v28 = vld [vmem:[%s1804_s3] sm:$0x3] }
  0x28   :  { %967 = vmatprep.subr.bf16.mxu0 %v1162_v12 }
  0x29   :  { %vm729_vm1 = vcmp.lt.s32.totalorder %v1528_v26, 1 }
  0x2a   :  { %887 = vmatpush3.bf16.msra.mxu1 %v321_v27  ;;  %v134_v27 = vsub.s32 1, %v1528_v26 }
  0x2b   :  { %888 = vmatprep.subr.bf16.mxu1 %v328_v39  ;;  %968 = vmatpush3.bf16.msra.mxu0 %v496_v15 }
  0x2c   :  { %181 = vmatmul.mubr.bf16.gmra.mxu0 %v71_v29  ;;  %221 = vmatmul.mubr.bf16.gmra.mxu1 %v75_v30  ;;  %v130_v29 = vsub.s32 0, %v1528_v26  ;;  %v1535_v30 = vrot.slane %v126_v28, %v134_v27 }
  0x2d   :  { %190 = vmatprep.mubr.bf16.mxu0 %v1161_v7  ;;  %230 = vmatprep.mubr.bf16.mxu1 %v1161_v7 }
  0x2e   :  { %969 = vmatprep.subr.bf16.mxu0 %v1162_v12 }
  0x2f   :  { %970 = vmatpush3.bf16.msra.mxu0 %v495_v18 }
  0x30   :  { %971 = vmatprep.subr.bf16.mxu0 %v1162_v12 }
  0x33   :  { %972 = vmatpush3.bf16.msra.mxu0 %v494_v21 }
  0x34   :  { %191 = vmatmul.mubr.bf16.gmra.mxu0 %v72_v34  ;;  %231 = vmatmul.mubr.bf16.gmra.mxu1 %v76_v35  ;;  %v1541_v35 = vrot.slane %v126_v28, %v130_v29 }
  0x35   :  { %200 = vmatprep.mubr.bf16.mxu0 %v1161_v7  ;;  %240 = vmatprep.mubr.bf16.mxu1 %v1161_v7  ;;  %v294_v7 = vld [vmem:[%s1805_s4 + $0x58] sm:$0xff] }
  0x36   :  { %v320_v41 = vpack.c.bf16 %v294_v7, %v293_v40  ;;  %973 = vmatprep.subr.bf16.mxu0 %v1162_v12 }
  0x37   :  { %974 = vmatpush3.bf16.msra.mxu0 %v493_v24 }
  0x38   :  { %889 = vmatpush3.bf16.msra.mxu1 %v320_v41  ;;  %975 = vmatprep.subr.bf16.mxu0 %v1162_v12 }
  0x39   :  { %890 = vmatprep.subr.bf16.mxu1 %v327_v44 }
  0x3c   :  { %201 = vmatmul.mubr.bf16.gmra.mxu0 %v73_v33  ;;  %241 = vmatmul.mubr.bf16.gmra.mxu1 %v77_v36 }
  0x3d   :  { %891 = vmatpush3.bf16.msra.mxu1 %v319_v47  ;;  %981 = vmatprep.mubr.msk.bf16.mxu0 %vm1163_vm0, %v1162_v12 }
  0x3e   :  { %892 = vmatprep.subr.bf16.mxu1 %v326_v50 }
  0x41   :  { %893 = vmatpush3.bf16.msra.mxu1 %v318_v53 }
  0x42   :  { %894 = vmatprep.subr.bf16.mxu1 %v325_v56 }
  0x45   :  { %895 = vmatpush3.bf16.msra.mxu1 %v317_v59 }
  0x46   :  { %896 = vmatprep.subr.bf16.mxu1 %v324_v62 }
  0x49   :  { %897 = vmatpush3.bf16.msra.mxu1 %v316_v1 }
  0x4a   :  { %898 = vmatprep.subr.bf16.mxu1 %v323_v4 }
  0x4d   :  { %899 = vmatpush3.bf16.msra.mxu1 %v315_v8 }
  0xe4   :  { %v172_v31 = vpop.f32.mrf.mxu0  ;;  %v1537_v34 = vpop.f32.mrf.mxu1 }
  0xe5   :  { %v173_v7 = vadd.f32 %v172_v31, %v1541_v35  ;;  %v213_v31 = vadd.f32 %v1537_v34, %v1541_v35 }
  0xe6   :  { %v174_v33 = vpop.f32.mrf.mxu0  ;;  %v214_v36 = vpop.f32.mrf.mxu1 }
  0xe7   :  { %v175_v37 = vadd.f32 %v174_v33, %v1535_v30  ;;  %v215_v10 = vadd.f32 %v214_v36, %v1535_v30 }
  0xe8   :  { %v176_v38 = vpop.f32.mrf.mxu0  ;;  %v1544_v39 = vpop.f32.mrf.mxu1 }
  0xe9   :  { %v177_v40 = vadd.f32 %v176_v38, %v1541_v35  ;;  %1049 = vtanh.f32 %v175_v37  ;;  %v217_v38 = vadd.f32 %v1544_v39, %v1541_v35 }
  0xea   :  { %v178_v41 = vpop.f32.mrf.mxu0  ;;  %v218_v42 = vpop.f32.mrf.mxu1 }
  0xeb   :  { %v179_v43 = vadd.f32 %v178_v41, %v1535_v30  ;;  %1051 = vtanh.f32 %v177_v40  ;;  %v219_v13 = vadd.f32 %v218_v42, %v1535_v30 }
  0xec   :  { %v182_v44 = vpop.f32.mrf.mxu0  ;;  %v1549_v45 = vpop.f32.mrf.mxu1 }
  0xed   :  { %1053 = vtanh.f32 %v179_v43  ;;  %v183_v52 = vadd.f32 %v182_v44, %v1541_v35 }
  0xee   :  { %1055 = vtanh.f32 %v173_v7  ;;  %v184_v46 = vpop.f32.mrf.mxu0  ;;  %v224_v47 = vpop.f32.mrf.mxu1 }
  0xef   :  { %v185_v48 = vadd.f32 %v184_v46, %v1535_v30  ;;  %v225_v33 = vadd.f32 %v224_v47, %v1535_v30  ;;  %v223_v46 = vadd.f32 %v1549_v45, %v1541_v35 }
  0xf0   :  { %v186_v49 = vpop.f32.mrf.mxu0  ;;  %v1552_v50 = vpop.f32.mrf.mxu1 }
  0xf1   :  { %v187_v51 = vadd.f32 %v186_v49, %v1541_v35  ;;  %1057 = vtanh.f32 %v185_v48 }
  0xf2   :  { %v188_v53 = vpop.f32.mrf.mxu0  ;;  %v228_v56 = vpop.f32.mrf.mxu1 }
  0xf3   :  { %v189_v54 = vadd.f32 %v188_v53, %v1535_v30  ;;  %1059 = vtanh.f32 %v187_v51  ;;  %v229_v36 = vadd.f32 %v228_v56, %v1535_v30 }
  0xf4   :  { %v192_v55 = vpop.f32.mrf.mxu0  ;;  %v1558_v61 = vpop.f32.mrf.mxu1 }
  0xf5   :  { %1061 = vtanh.f32 %v189_v54  ;;  %v193_v1 = vadd.f32 %v192_v55, %v1541_v35 }
  0xf6   :  { %1063 = vtanh.f32 %v183_v52  ;;  %v194_v57 = vpop.f32.mrf.mxu0  ;;  %v1050_v59 = vpop.eup %1049  ;;  %v227_v52 = vadd.f32 %v1552_v50, %v1541_v35 }
  0xf7   :  { %v195_v58 = vadd.f32 %v194_v57, %v1535_v30  ;;  %v234_v9 = vpop.f32.mrf.mxu1 }
  0xf8   :  { %v196_v60 = vpop.f32.mrf.mxu0  ;;  %v1052_v62 = vpop.eup %1051  ;;  %v235_v48 = vadd.f32 %v234_v9, %v1535_v30 }
  0xf9   :  { %v197_v63 = vadd.f32 %v196_v60, %v1541_v35  ;;  %1065 = vtanh.f32 %v195_v58  ;;  %v1566_v17 = vpop.f32.mrf.mxu1  ;;  %v233_v60 = vadd.f32 %v1558_v61, %v1541_v35 }
  0xfa   :  { %v1054_v0 = vpop.eup %1053  ;;  %v198_v2 = vpop.f32.mrf.mxu0 }
  0xfb   :  { %v1056_v3 = vpop.eup %1055  ;;  %v199_v4 = vadd.f32 %v198_v2, %v1535_v30  ;;  %v332_v5 = vpack.c.bf16 %v1054_v0, %v1050_v59  ;;  %1067 = vtanh.f32 %v197_v63  ;;  %v238_v28 = vpop.f32.mrf.mxu1  ;;  %v237_v2 = vadd.f32 %v1566_v17, %v1541_v35 }
  0xfc   :  { %v202_v6 = vpop.f32.mrf.mxu0  ;;  %v331_v8 = vpack.c.bf16 %v1052_v62, %v1056_v3  ;;  %v239_v49 = vadd.f32 %v238_v28, %v1535_v30 }
  0xfd   :  { %1069 = vtanh.f32 %v199_v4  ;;  %386 = vmatprep.mubr.bf16.mxu1 %v332_v5  ;;  %v203_v21 = vadd.f32 %v202_v6, %v1541_v35  ;;  %v242_v40 = vpop.f32.mrf.mxu1 }
  0xfe   :  { %1071 = vtanh.f32 %v193_v1  ;;  %v204_v11 = vpop.f32.mrf.mxu0  ;;  %387 = vmatmul.mubr.bf16.vlgmr.msra.gmra.mxu1 %v331_v8  ;;  %v1058_v15 = vpop.eup %1057  ;;  %v243_v8 = vadd.f32 %v242_v40, %v1541_v35 }
  0xff   :  { %v205_v14 = vadd.f32 %v204_v11, %v1535_v30  ;;  %1073 = vtanh.f32 %v215_v10  ;;  %v244_v44 = vpop.f32.mrf.mxu1 }
 0x100   :  { %v206_v16 = vpop.f32.mrf.mxu0  ;;  %v1060_v18 = vpop.eup %1059  ;;  %1075 = vtanh.f32 %v219_v13  ;;  %v245_v50 = vadd.f32 %v244_v44, %v1535_v30 }
 0x101   :  { %v207_v19 = vadd.f32 %v206_v16, %v1541_v35  ;;  %1077 = vtanh.f32 %v205_v14  ;;  %v246_v53 = vpop.f32.mrf.mxu1 }
 0x102   :  { %v1062_v20 = vpop.eup %1061  ;;  %v208_v22 = vpop.f32.mrf.mxu0 }
 0x103   :  { %v1064_v23 = vpop.eup %1063  ;;  %v209_v24 = vadd.f32 %v208_v22, %v1535_v30  ;;  %v334_v25 = vpack.c.bf16 %v1062_v20, %v1058_v15  ;;  %1079 = vtanh.f32 %v207_v19  ;;  %v248_v59 = vpop.f32.mrf.mxu1 }
 0x104   :  { %v333_v27 = vpack.c.bf16 %v1060_v18, %v1064_v23  ;;  %v249_v0 = vadd.f32 %v248_v59, %v1535_v30  ;;  %v247_v30 = vadd.f32 %v246_v53, %v1541_v35  ;;  %v478_v35 = vld [vmem:[%s1807_s6 + $0x20] sm:$0xff]  ;;  %v479_v23 = vld [vmem:[%s1807_s6 + $0x28] sm:$0xff] }
 0x105   :  { %1081 = vtanh.f32 %v209_v24  ;;  %394 = vmatprep.mubr.bf16.mxu1 %v334_v25  ;;  %v492_v24 = vpack.c.bf16 %v479_v23, %v478_v35  ;;  %v476_v25 = vld [vmem:[%s1807_s6 + $0x10] sm:$0xff] }
 0x106   :  { %1083 = vtanh.f32 %v203_v21  ;;  %395 = vmatmul.mubr.bf16.gmra.mxu1 %v333_v27  ;;  %v1066_v37 = vpop.eup %1065  ;;  %v477_v27 = vld [vmem:[%s1807_s6 + $0x18] sm:$0xff] }
 0x107   :  { %1085 = vtanh.f32 %v213_v31  ;;  %976 = vmatpush3.bf16.msra.mxu0 %v492_v24  ;;  %v491_v28 = vpack.c.bf16 %v477_v27, %v476_v25  ;;  %v474_v31 = vld [vmem:[%s1807_s6] sm:$0xff] }
 0x108   :  { %v1068_v7 = vpop.eup %1067  ;;  %1087 = vtanh.f32 %v225_v33  ;;  %977 = vmatprep.subr.bf16.mxu0 %v1162_v12  ;;  %v475_v33 = vld [vmem:[%s1807_s6 + $0x8] sm:$0xff] }
 0x109   :  { %1089 = vtanh.f32 %v229_v36  ;;  %v490_v36 = vpack.c.bf16 %v475_v33, %v474_v31 }
 0x10a   :  { %v1070_v41 = vpop.eup %1069  ;;  %1091 = vtanh.f32 %v217_v38 }
 0x10b   :  { %v1072_v42 = vpop.eup %1071  ;;  %v336_v34 = vpack.c.bf16 %v1070_v41, %v1066_v37  ;;  %1093 = vtanh.f32 %v223_v46  ;;  %978 = vmatpush3.bf16.msra.mxu0 %v491_v28  ;;  %v1616_v41 = vld [vmem:[%s1806_s5] ss:$0 sm:$0xff] }
 0x10c   :  { %v335_v43 = vpack.c.bf16 %v1068_v7, %v1072_v42  ;;  %v1074_v47 = vpop.eup %1073  ;;  %1095 = vtanh.f32 %v235_v48  ;;  %979 = vmatprep.subr.bf16.mxu0 %v1162_v12 }
 0x10d   :  { %402 = vmatprep.mubr.bf16.mxu1 %v336_v34  ;;  %v1076_v39 = vpop.eup %1075  ;;  %1097 = vtanh.f32 %v239_v49 }
 0x10e   :  { %403 = vmatmul.mubr.bf16.gmra.mxu1 %v335_v43  ;;  %v1078_v51 = vpop.eup %1077  ;;  %v340_v57 = vpack.c.bf16 %v1076_v39, %v1074_v47  ;;  %1099 = vtanh.f32 %v227_v52 }
 0x10f   :  { %1101 = vtanh.f32 %v233_v60  ;;  %980 = vmatpush3.bf16.msra.mxu0 %v490_v36 }
 0x110   :  { %v1080_v54 = vpop.eup %1079  ;;  %1103 = vtanh.f32 %v245_v50 }
 0x111   :  { %1105 = vtanh.f32 %v249_v0 }
 0x112   :  { %v1082_v55 = vpop.eup %1081  ;;  %1107 = vtanh.f32 %v237_v2 }
 0x113   :  { %v1084_v56 = vpop.eup %1083  ;;  %v338_v45 = vpack.c.bf16 %v1082_v55, %v1078_v51  ;;  %1109 = vtanh.f32 %v243_v8 }
 0x114   :  { %v337_v58 = vpack.c.bf16 %v1080_v54, %v1084_v56  ;;  %v1086_v62 = vpop.eup %1085  ;;  %1111 = vtanh.f32 %v247_v30 }
 0x115   :  { %410 = vmatprep.mubr.bf16.mxu1 %v338_v45  ;;  %v1088_v63 = vpop.eup %1087 }
 0x116   :  { %411 = vmatmul.mubr.bf16.gmra.mxu1 %v337_v58  ;;  %v1090_v1 = vpop.eup %1089 }
 0x117   :  { %418 = vmatprep.mubr.bf16.mxu1 %v340_v57  ;;  %v1092_v3 = vpop.eup %1091  ;;  %v342_v4 = vpack.c.bf16 %v1090_v1, %v1088_v63 }
 0x118   :  { %v339_v61 = vpack.c.bf16 %v1092_v3, %v1086_v62  ;;  %v1094_v5 = vpop.eup %1093 }
 0x119   :  { %v1096_v6 = vpop.eup %1095 }
 0x11a   :  { %v1098_v9 = vpop.eup %1097 }
 0x11b   :  { %v1100_v10 = vpop.eup %1099  ;;  %v344_v11 = vpack.c.bf16 %v1098_v9, %v1096_v6 }
 0x11c   :  { %v341_v13 = vpack.c.bf16 %v1100_v10, %v1094_v5  ;;  %v1102_v14 = vpop.eup %1101 }
 0x11d   :  { %v1104_v15 = vpop.eup %1103 }
 0x11e   :  { %419 = vmatmul.mubr.bf16.gmra.mxu1 %v339_v61  ;;  %v1106_v16 = vpop.eup %1105 }
 0x11f   :  { %426 = vmatprep.mubr.bf16.mxu1 %v342_v4  ;;  %v1108_v17 = vpop.eup %1107  ;;  %v346_v18 = vpack.c.bf16 %v1106_v16, %v1104_v15 }
 0x120   :  { %v343_v19 = vpack.c.bf16 %v1108_v17, %v1102_v14  ;;  %v1110_v20 = vpop.eup %1109 }
 0x121   :  { %v1112_v21 = vpop.eup %1111 }
 0x122   :  { %v345_v22 = vpack.c.bf16 %v1112_v21, %v1110_v20 }
 0x126   :  { %427 = vmatmul.mubr.bf16.gmra.mxu1 %v341_v13 }
 0x127   :  { %434 = vmatprep.mubr.bf16.mxu1 %v344_v11 }
 0x12e   :  { %435 = vmatmul.mubr.bf16.gmra.mxu1 %v343_v19 }
 0x12f   :  { %442 = vmatprep.mubr.bf16.mxu1 %v346_v18 }
 0x136   :  { %443 = vmatmul.mubr.bf16.gmra.mxu1 %v345_v22 }
 0x1be   :  { %v900_v37 = vpop.f32.mrf.mxu1 }
 0x1c0   :  { %v901_v38 = vpop.f32.mrf.mxu1 }
 0x1c1   :  { %v902_v7 = vadd.f32 %v901_v38, %v900_v37 }
 0x1c2   :  { %v903_v40 = vpop.f32.mrf.mxu1 }
 0x1c3   :  { %v389_v44 = vadd.f32 %v902_v7, %v1616_v41 }
 0x1c4   :  { %v904_v42 = vpop.f32.mrf.mxu1 }
 0x1c5   :  { %v905_v34 = vadd.f32 %v904_v42, %v903_v40 }
 0x1c6   :  { %v906_v43 = vpop.f32.mrf.mxu1 }
 0x1c7   :  { %v392_v46 = vadd.f32 %v905_v34, %v1616_v41 }
 0x1c8   :  { %v907_v47 = vpop.f32.mrf.mxu1 }
 0x1c9   :  { %v498_v48 = vpack.c.bf16 %v392_v46, %v389_v44  ;;  %v908_v49 = vadd.f32 %v907_v47, %v906_v43  ;;  %v451_v14 = vadd.f32 %v392_v46, %v389_v44  ;;  %v62_v46 = vrot.slane %v1410_v32, 4 }
 0x1ca   :  { %v909_v39 = vpop.f32.mrf.mxu1 }
 0x1cb   :  { %982 = vmatmul.mubr.bf16.vlgmr.msra.gmra.mxu0 %v498_v48  ;;  %v397_v54 = vadd.f32 %v908_v49, %v1616_v41 }
 0x1cc   :  { %v910_v51 = vpop.f32.mrf.mxu1  ;;  %985 = vmatprep.mubr.msk.bf16.mxu0 %vm1163_vm0, %v1162_v12 }
 0x1cd   :  { %v911_v52 = vadd.f32 %v910_v51, %v909_v39  ;;  %v452_v17 = vadd.f32 %v451_v14, %v397_v54 }
 0x1ce   :  { %v912_v53 = vpop.f32.mrf.mxu1 }
 0x1cf   :  { %v400_v55 = vadd.f32 %v911_v52, %v1616_v41 }
 0x1d0   :  { %v913_v56 = vpop.f32.mrf.mxu1 }
 0x1d1   :  { %v499_v45 = vpack.c.bf16 %v400_v55, %v397_v54  ;;  %v914_v58 = vadd.f32 %v913_v56, %v912_v53  ;;  %v453_v21 = vadd.f32 %v452_v17, %v400_v55  ;;  %v63_v54 = vadd.f32 %v62_v46, %v1410_v32 }
 0x1d2   :  { %v915_v57 = vpop.f32.mrf.mxu1 }
 0x1d3   :  { %986 = vmatmul.mubr.bf16.gmra.mxu0 %v499_v45  ;;  %v405_v50 = vadd.f32 %v914_v58, %v1616_v41 }
 0x1d4   :  { %v916_v59 = vpop.f32.mrf.mxu1  ;;  %989 = vmatprep.mubr.msk.bf16.mxu0 %vm1163_vm0, %v1162_v12 }
 0x1d5   :  { %v917_v60 = vadd.f32 %v916_v59, %v915_v57  ;;  %v454_v23 = vadd.f32 %v453_v21, %v405_v50 }
 0x1d6   :  { %v918_v62 = vpop.f32.mrf.mxu1 }
 0x1d7   :  { %v408_v63 = vadd.f32 %v917_v60, %v1616_v41 }
 0x1d8   :  { %v919_v0 = vpop.f32.mrf.mxu1 }
 0x1d9   :  { %v500_v1 = vpack.c.bf16 %v408_v63, %v405_v50  ;;  %v920_v3 = vadd.f32 %v919_v0, %v918_v62  ;;  %v455_v27 = vadd.f32 %v454_v23, %v408_v63  ;;  %v64_v62 = vrot.slane %v63_v54, 2 }
 0x1da   :  { %v921_v2 = vpop.f32.mrf.mxu1 }
 0x1db   :  { %990 = vmatmul.mubr.bf16.gmra.mxu0 %v500_v1  ;;  %v413_v6 = vadd.f32 %v920_v3, %v1616_v41  ;;  %v65_v3 = vadd.f32 %v64_v62, %v63_v54 }
 0x1dc   :  { %v922_v4 = vpop.f32.mrf.mxu1  ;;  %993 = vmatprep.mubr.msk.bf16.mxu0 %vm1163_vm0, %v1162_v12 }
 0x1dd   :  { %v923_v61 = vadd.f32 %v922_v4, %v921_v2  ;;  %v456_v33 = vadd.f32 %v455_v27, %v413_v6 }
 0x1de   :  { %v924_v5 = vpop.f32.mrf.mxu1 }
 0x1df   :  { %v416_v8 = vadd.f32 %v923_v61, %v1616_v41 }
 0x1e0   :  { %v925_v9 = vpop.f32.mrf.mxu1 }
 0x1e1   :  { %v501_v30 = vpack.c.bf16 %v416_v8, %v413_v6  ;;  %v926_v11 = vadd.f32 %v925_v9, %v924_v5  ;;  %v457_v40 = vadd.f32 %v456_v33, %v416_v8  ;;  %v66_v5 = vrot.slane %v65_v3, 1 }
 0x1e2   :  { %v927_v10 = vpop.f32.mrf.mxu1 }
 0x1e3   :  { %994 = vmatmul.mubr.bf16.gmra.mxu0 %v501_v30  ;;  %v421_v18 = vadd.f32 %v926_v11, %v1616_v41  ;;  %v67_v9 = vadd.f32 %v66_v5, %v65_v3 }
 0x1e4   :  { %v928_v13 = vpop.f32.mrf.mxu1  ;;  %997 = vmatprep.mubr.msk.bf16.mxu0 %vm1163_vm0, %v1162_v12 }
 0x1e5   :  { %v929_v15 = vadd.f32 %v928_v13, %v927_v10  ;;  %v458_v34 = vadd.f32 %v457_v40, %v421_v18  ;;  %v69_v10 = vmul.f32 0.0078125, %v67_v9 }
 0x1e6   :  { %v930_v16 = vpop.f32.mrf.mxu1 }
 0x1e7   :  { %v424_v19 = vadd.f32 %v929_v15, %v1616_v41 }
 0x1e8   :  { %v931_v20 = vpop.f32.mrf.mxu1 }
 0x1e9   :  { %v502_v22 = vpack.c.bf16 %v424_v19, %v421_v18  ;;  %v932_v24 = vadd.f32 %v931_v20, %v930_v16  ;;  %v459_v47 = vadd.f32 %v458_v34, %v424_v19 }
 0x1ea   :  { %v933_v35 = vpop.f32.mrf.mxu1 }
 0x1eb   :  { %998 = vmatmul.mubr.bf16.gmra.mxu0 %v502_v22  ;;  %v429_v36 = vadd.f32 %v932_v24, %v1616_v41 }
 0x1ec   :  { %v934_v25 = vpop.f32.mrf.mxu1  ;;  %1001 = vmatprep.mubr.msk.bf16.mxu0 %vm1163_vm0, %v1162_v12 }
 0x1ed   :  { %v935_v28 = vadd.f32 %v934_v25, %v933_v35  ;;  %v460_v49 = vadd.f32 %v459_v47, %v429_v36 }
 0x1ee   :  { %v936_v31 = vpop.f32.mrf.mxu1 }
 0x1ef   :  { %v432_v37 = vadd.f32 %v935_v28, %v1616_v41 }
 0x1f0   :  { %v937_v38 = vpop.f32.mrf.mxu1 }
 0x1f1   :  { %v503_v7 = vpack.c.bf16 %v432_v37, %v429_v36  ;;  %v938_v43 = vadd.f32 %v937_v38, %v936_v31  ;;  %v461_v55 = vadd.f32 %v460_v49, %v432_v37 }
 0x1f2   :  { %v939_v42 = vpop.f32.mrf.mxu1 }
 0x1f3   :  { %1002 = vmatmul.mubr.bf16.gmra.mxu0 %v503_v7  ;;  %v437_v51 = vadd.f32 %v938_v43, %v1616_v41 }
 0x1f4   :  { %v940_v44 = vpop.f32.mrf.mxu1  ;;  %1005 = vmatprep.mubr.msk.bf16.mxu0 %vm1163_vm0, %v1162_v12 }
 0x1f5   :  { %v941_v48 = vadd.f32 %v940_v44, %v939_v42  ;;  %v462_v58 = vadd.f32 %v461_v55, %v437_v51  ;;  %v883_v44 = vld [vmem:[%s1808_s7] ss:$0 sm:$0xff] }
 0x1f6   :  { %v942_v39 = vpop.f32.mrf.mxu1 }
 0x1f7   :  { %v440_v52 = vadd.f32 %v941_v48, %v1616_v41 }
 0x1f8   :  { %v943_v53 = vpop.f32.mrf.mxu1 }
 0x1f9   :  { %v944_v56 = vadd.f32 %v943_v53, %v942_v39  ;;  %v504_v45 = vpack.c.bf16 %v440_v52, %v437_v51  ;;  %v463_v50 = vadd.f32 %v462_v58, %v440_v52 }
 0x1fa   :  { %v945_v57 = vpop.f32.mrf.mxu1 }
 0x1fb   :  { %v445_v59 = vadd.f32 %v944_v56, %v1616_v41  ;;  %1006 = vmatmul.mubr.bf16.gmra.mxu0 %v504_v45 }
 0x1fc   :  { %v946_v60 = vpop.f32.mrf.mxu1  ;;  %1009 = vmatprep.mubr.msk.bf16.mxu0 %vm1163_vm0, %v1162_v12 }
 0x1fd   :  { %v947_v63 = vadd.f32 %v946_v60, %v945_v57  ;;  %v464_v0 = vadd.f32 %v463_v50, %v445_v59 }
 0x1ff   :  { %v448_v1 = vadd.f32 %v947_v63, %v1616_v41 }
 0x201   :  { %v465_v2 = vadd.f32 %v464_v0, %v448_v1  ;;  %v505_v32 = vpack.c.bf16 %v448_v1, %v445_v59 }
 0x203   :  { %v466_v4 = vrot.slane %v465_v2, 4  ;;  %1010 = vmatmul.mubr.bf16.gmra.mxu0 %v505_v32 }
 0x204   :  { %1013 = vmatprep.mubr.msk.bf16.mxu0 %vm1163_vm0, %v1162_v12 }
 0x205   :  { %v467_v61 = vadd.f32 %v466_v4, %v465_v2 }
 0x207   :  { %v468_v6 = vrot.slane %v467_v61, 2 }
 0x209   :  { %v469_v8 = vadd.f32 %v468_v6, %v467_v61 }
 0x20b   :  { %v470_v30 = vrot.slane %v469_v8, 1 }
 0x20d   :  { %v471_v11 = vadd.f32 %v470_v30, %v469_v8 }
 0x20f   :  { %v472_v13 = vmul.f32 0.0078125, %v471_v11 }
 0x211   :  { %v473_v14 = vadd.f32 %v472_v13, %v69_v10 }
 0x213   :  { %v506_v15 = vpack.c.bf16 %v473_v14, %v473_v14 }
 0x215   :  { %1014 = vmatmul.mubr.bf16.gmra.mxu0 %v506_v15 }
 0x28b   :  { %v548_v41 = vpop.f32.mrf.mxu0 }
 0x28c   :  { %v549_v48 = vadd.f32 %v883_v44, %v548_v41 }
 0x28d   :  { %v983_v16 = vpop.f32.mrf.mxu0 }
 0x28f   :  { %v551_v17 = vpop.f32.mrf.mxu0 }
 0x290   :  { %v552_v47 = vadd.f32 %v883_v44, %v551_v17 }
 0x291   :  { %v984_v18 = vpop.f32.mrf.mxu0 }
 0x292   :  { %1113 = vtanh.f32 %v552_v47 }
 0x293   :  { %v556_v19 = vpop.f32.mrf.mxu0  ;;  %1115 = vtanh.f32 %v549_v48 }
 0x294   :  { %v557_v49 = vadd.f32 %v883_v44, %v556_v19 }
 0x295   :  { %v987_v20 = vpop.f32.mrf.mxu0 }
 0x296   :  { %1117 = vtanh.f32 %v557_v49 }
 0x297   :  { %v559_v21 = vpop.f32.mrf.mxu0 }
 0x298   :  { %v560_v51 = vadd.f32 %v883_v44, %v559_v21 }
 0x299   :  { %v988_v12 = vpop.f32.mrf.mxu0 }
 0x29a   :  { %1119 = vtanh.f32 %v560_v51 }
 0x29b   :  { %v564_v22 = vpop.f32.mrf.mxu0 }
 0x29c   :  { %v565_v53 = vadd.f32 %v883_v44, %v564_v22 }
 0x29d   :  { %v991_v35 = vpop.f32.mrf.mxu0 }
 0x29e   :  { %1121 = vtanh.f32 %v565_v53 }
 0x29f   :  { %v567_v23 = vpop.f32.mrf.mxu0  ;;  %v1114_v63 = vpop.eup %1113 }
 0x2a0   :  { %v568_v54 = vadd.f32 %v883_v44, %v567_v23  ;;  %v1655_v0 = vpop.eup %1115  ;;  %v712_v4 = vrot.slane %v1114_v63, 7 }
 0x2a1   :  { %v992_v24 = vpop.f32.mrf.mxu0  ;;  %v711_v9 = vrot.slane %v1655_v0, 7 }
 0x2a2   :  { %1123 = vtanh.f32 %v568_v54 }
 0x2a3   :  { %v572_v25 = vpop.f32.mrf.mxu0  ;;  %v1118_v2 = vpop.eup %1117  ;;  %v744_v15 = vsel %vm729_vm1, %v711_v9, %v712_v4 }
 0x2a4   :  { %v573_v59 = vadd.f32 %v883_v44, %v572_v25  ;;  %v713_v30 = vrot.slane %v1118_v2, 7  ;;  %v747_v35 = vsub.f32 %v1114_v63, %v744_v15  ;;  %v636_v15 = vld [vmem:[%s1802_s1 + $0x8] sm:$0xff] }
 0x2a5   :  { %v995_v27 = vpop.f32.mrf.mxu0 }
 0x2a6   :  { %v743_v20 = vsel %vm729_vm1, %v712_v4, %v713_v30 }
 0x2a7   :  { %v575_v28 = vpop.f32.mrf.mxu0  ;;  %v1120_v3 = vpop.eup %1119 }
 0x2a8   :  { %v576_v56 = vadd.f32 %v883_v44, %v575_v28  ;;  %v714_v11 = vrot.slane %v1120_v3, 7 }
 0x2a9   :  { %v996_v31 = vpop.f32.mrf.mxu0 }
 0x2aa   :  { %1125 = vtanh.f32 %v576_v56  ;;  %v742_v23 = vsel %vm729_vm1, %v713_v30, %v714_v11 }
 0x2ab   :  { %v580_v33 = vpop.f32.mrf.mxu0  ;;  %v1122_v5 = vpop.eup %1121 }
 0x2ac   :  { %v581_v45 = vadd.f32 %v883_v44, %v580_v33  ;;  %v715_v17 = vrot.slane %v1122_v5, 7  ;;  %v748_v33 = vsub.f32 %v1118_v2, %v743_v20 }
 0x2ad   :  { %v999_v36 = vpop.f32.mrf.mxu0 }
 0x2ae   :  { %1127 = vtanh.f32 %v581_v45  ;;  %v741_v36 = vsel %vm729_vm1, %v714_v11, %v715_v17  ;;  %v764_v49 = vand.u32 2147483647, %v748_v33 }
 0x2af   :  { %v583_v37 = vpop.f32.mrf.mxu0  ;;  %v1658_v8 = vpop.eup %1123 }
 0x2b0   :  { %v584_v50 = vadd.f32 %v883_v44, %v583_v37  ;;  %v716_v25 = vrot.slane %v1658_v8, 7 }
 0x2b1   :  { %v1000_v38 = vpop.f32.mrf.mxu0 }
 0x2b2   :  { %v740_v47 = vsel %vm729_vm1, %v715_v17, %v716_v25 }
 0x2b3   :  { %v588_v40 = vpop.f32.mrf.mxu0  ;;  %v751_v45 = vsub.f32 %v1658_v8, %v740_v47 }
 0x2b4   :  { %v589_v1 = vadd.f32 %v883_v44, %v588_v40 }
 0x2b5   :  { %v1003_v7 = vpop.f32.mrf.mxu0 }
 0x2b7   :  { %v591_v42 = vpop.f32.mrf.mxu0  ;;  %v1661_v10 = vpop.eup %1125 }
 0x2b8   :  { %v592_v32 = vadd.f32 %v883_v44, %v591_v42  ;;  %v718_v12 = vrot.slane %v1661_v10, 7  ;;  %v763_v42 = vand.u32 2147483647, %v747_v35 }
 0x2b9   :  { %v1004_v34 = vpop.f32.mrf.mxu0 }
 0x2ba   :  { %v749_v34 = vsub.f32 %v1120_v3, %v742_v23 }
 0x2bb   :  { %v596_v43 = vpop.f32.mrf.mxu0  ;;  %v1663_v14 = vpop.eup %1127 }
 0x2bc   :  { %v597_v61 = vadd.f32 %v883_v44, %v596_v43  ;;  %v822_v31 = vsub.f32 %v1663_v14, %v718_v12  ;;  %v765_v56 = vand.u32 2147483647, %v749_v34  ;;  %v638_v34 = vld [vmem:[%s1802_s1 + $0x18] sm:$0xff] }
 0x2bd   :  { %v1007_v46 = vpop.f32.mrf.mxu0 }
 0x2be   :  { %v750_v46 = vsub.f32 %v1122_v5, %v741_v36  ;;  %v767_v5 = vand.u32 2147483647, %v751_v45  ;;  %v640_v45 = vld [vmem:[%s1802_s1 + $0x28] sm:$0xff] }
 0x2bf   :  { %v599_v39 = vpop.f32.mrf.mxu0 }
 0x2c0   :  { %v600_v6 = vadd.f32 %v883_v44, %v599_v39  ;;  %v823_v39 = vand.u32 2147483647, %v822_v31  ;;  %v637_v31 = vld [vmem:[%s1802_s1 + $0x10] sm:$0xff] }
 0x2c1   :  { %v1008_v52 = vpop.f32.mrf.mxu0 }
 0x2c2   :  { %v719_v52 = vrot.slane %v1663_v14, 7 }
 0x2c3   :  { %v604_v55 = vpop.f32.mrf.mxu0 }
 0x2c4   :  { %v605_v18 = vadd.f32 %v883_v44, %v604_v55  ;;  %v737_v2 = vsel %vm729_vm1, %v718_v12, %v719_v52 }
 0x2c5   :  { %v1011_v57 = vpop.f32.mrf.mxu0  ;;  %v754_v11 = vsub.f32 %v1663_v14, %v737_v2 }
 0x2c7   :  { %v607_v58 = vpop.f32.mrf.mxu0 }
 0x2c8   :  { %v608_v60 = vadd.f32 %v883_v44, %v607_v58 }
 0x2c9   :  { %v1012_v62 = vpop.f32.mrf.mxu0 }
 0x2ca   :  { %1129 = vtanh.f32 %v608_v60  ;;  %v766_v60 = vand.u32 2147483647, %v750_v46  ;;  %v824_v62 = vsel %vm807_vm2, %v823_v39, 0.0  ;;  %v639_v39 = vld [vmem:[%s1802_s1 + $0x20] sm:$0xff] }
 0x2cb   :  { %1131 = vtanh.f32 %v573_v59 }
 0x2cc   :  { %1133 = vtanh.f32 %v584_v50 }
 0x2cd   :  { %1135 = vtanh.f32 %v589_v1 }
 0x2ce   :  { %1137 = vtanh.f32 %v592_v32 }
 0x2cf   :  { %1139 = vtanh.f32 %v597_v61 }
 0x2d0   :  { %1141 = vtanh.f32 %v600_v6 }
 0x2d5   :  { %v612_v13 = vpop.f32.mrf.mxu0 }
 0x2d6   :  { %v613_v41 = vadd.f32 %v883_v44, %v612_v13  ;;  %v635_v13 = vld [vmem:[%s1802_s1] sm:$0xff] }
 0x2d7   :  { %v1667_v16 = vpop.eup %1129  ;;  %v1015_v19 = vpop.f32.mrf.mxu0 }
 0x2d8   :  { %1143 = vtanh.f32 %v613_v41  ;;  %v1672_v21 = vrot.slane %v1667_v16, 7  ;;  %v1132_v22 = vpop.eup %1131 }
 0x2d9   :  { %v615_v24 = vpop.f32.mrf.mxu0  ;;  %1145 = vtanh.f32 %v605_v18  ;;  %v717_v40 = vrot.slane %v1132_v22, 7  ;;  %v1134_v44 = vpop.eup %1133 }
 0x2da   :  { %v805_v27 = vsub.f32 %v1655_v0, %v1672_v21  ;;  %v745_v28 = vsel %vm729_vm1, %v1672_v21, %v711_v9  ;;  %v1136_v55 = vpop.eup %1135  ;;  %v720_v57 = vrot.slane %v1134_v44, 7 }
 0x2db   :  { %v1016_v37 = vpop.f32.mrf.mxu0  ;;  %v746_v38 = vsub.f32 %v1655_v0, %v745_v28  ;;  %v739_v53 = vsel %vm729_vm1, %v716_v25, %v717_v40  ;;  %v738_v54 = vsel %vm729_vm1, %v717_v40, %v718_v12  ;;  %v1138_v59 = vpop.eup %1137  ;;  %v721_v4 = vrot.slane %v1136_v55, 7 }
 0x2dc   :  { %v806_v7 = vand.u32 2147483647, %v805_v27  ;;  %v1140_v50 = vpop.eup %1139  ;;  %v752_v63 = vsub.f32 %v1132_v22, %v739_v53  ;;  %v753_v32 = vsub.f32 %v1661_v10, %v738_v54  ;;  %v722_v8 = vrot.slane %v1138_v59, 7 }
 0x2dd   :  { %v762_v43 = vand.u32 2147483647, %v746_v38  ;;  %v1700_v3 = vpop.eup %1141  ;;  %v736_v9 = vsel %vm729_vm1, %v719_v52, %v720_v57  ;;  %v723_v19 = vrot.slane %v1140_v50, 7  ;;  %v735_v22 = vsel %vm729_vm1, %v720_v57, %v721_v4 }
 0x2de   :  { %v808_v48 = vsel %vm807_vm2, %v806_v7, 0.0  ;;  %v768_v41 = vand.u32 2147483647, %v752_v63  ;;  %v769_v17 = vand.u32 2147483647, %v753_v32  ;;  %v724_v12 = vrot.slane %v1700_v3, 7 }
 0x2df   :  { %809 = vadd.xlane.f32.xlu1 %v808_v48  ;;  %v778_v51 = vadd.f32 %v763_v42, %v762_v43  ;;  %v734_v23 = vsel %vm729_vm1, %v721_v4, %v722_v8  ;;  %v770_v27 = vand.u32 2147483647, %v754_v11  ;;  %v733_v37 = vsel %vm729_vm1, %v722_v8, %v723_v19  ;;  %v641_v63 = vld [vmem:[%s1802_s1 + $0x30] sm:$0xff]  ;;  %v642_v4 = vld [vmem:[%s1802_s1 + $0x38] sm:$0xff] }
 0x2e0   :  { %v756_v38 = vsub.f32 %v1136_v55, %v735_v22  ;;  %v732_v40 = vsel %vm729_vm1, %v723_v19, %v724_v12  ;;  %v757_v7 = vsub.f32 %v1138_v59, %v734_v23  ;;  %v758_v48 = vsub.f32 %v1140_v50, %v733_v37  ;;  %v645_v22 = vld [vmem:[%s1802_s1 + $0x50] sm:$0xff] }
 0x2e1   :  { %v779_v58 = vadd.f32 %v778_v51, %v764_v49  ;;  %v759_v55 = vsub.f32 %v1700_v3, %v732_v40  ;;  %v648_v40 = vld [vmem:[%s1802_s1 + $0x68] sm:$0xff] }
 0x2e2   :  { %v772_v51 = vand.u32 2147483647, %v756_v38  ;;  %v774_v50 = vand.u32 2147483647, %v758_v48  ;;  %v650_v48 = vld [vmem:[%s1802_s1 + $0x78] sm:$0xff] }
 0x2e3   :  { %v780_v1 = vadd.f32 %v779_v58, %v765_v56  ;;  %825 = vadd.xlane.f32.xlu1 %v824_v62  ;;  %v773_v56 = vand.u32 2147483647, %v757_v7  ;;  %v775_v3 = vand.u32 2147483647, %v759_v55 }
 0x2e5   :  { %v1702_v61 = vpop.eup %1143  ;;  %v781_v6 = vadd.f32 %v780_v1, %v766_v60 }
 0x2e6   :  { %v1709_v30 = vrot.slane %v1702_v61, %v130_v29  ;;  %v848_v10 = vsub.f32 %v1663_v14, %v1702_v61  ;;  %v1146_v20 = vpop.eup %1145  ;;  %v755_v14 = vsub.f32 %v1134_v44, %v736_v9 }
 0x2e7   :  { %v782_v18 = vadd.f32 %v781_v6, %v767_v5  ;;  %v725_v36 = vrot.slane %v1146_v20, 7 }
 0x2e8   :  { %v849_v29 = vand.u32 2147483647, %v848_v10  ;;  %v655_v24 = vsub.f32 %v1709_v30, %v635_v13  ;;  %v656_v25 = vsub.f32 %v1709_v30, %v636_v15  ;;  %v771_v42 = vand.u32 2147483647, %v755_v14  ;;  %v643_v10 = vld [vmem:[%s1802_s1 + $0x40] sm:$0xff] }
 0x2e9   :  { %v783_v35 = vadd.f32 %v782_v18, %v768_v41  ;;  %v657_v44 = vsub.f32 %v1709_v30, %v637_v31  ;;  %v731_v49 = vsel %vm729_vm1, %v724_v12, %v725_v36  ;;  %v658_v53 = vsub.f32 %v1709_v30, %v638_v34  ;;  %v644_v18 = vld [vmem:[%s1802_s1 + $0x48] sm:$0xff] }
 0x2ea   :  { %v850_v28 = vsel %vm807_vm2, %v849_v29, 0.0  ;;  %v671_v46 = vmul.f32 %v655_v24, %v655_v24  ;;  %v672_v47 = vmul.f32 %v656_v25, %v656_v25  ;;  %v730_v54 = vsel %vm729_vm1, %v725_v36, %v1672_v21  ;;  %v646_v25 = vld [vmem:[%s1802_s1 + $0x58] sm:$0xff] }
 0x2eb   :  { %v784_v33 = vadd.f32 %v783_v35, %v769_v17  ;;  %851 = vadd.xlane.f32.xlu1 %v850_v28  ;;  %v659_v58 = vsub.f32 %v1709_v30, %v639_v39  ;;  %v673_v59 = vmul.f32 %v657_v44, %v657_v44  ;;  %v760_v62 = vsub.f32 %v1146_v20, %v731_v49 }
 0x2ec   :  { %v687_v60 = vadd.f32 %v672_v47, %v671_v46  ;;  %v660_v21 = vsub.f32 %v1709_v30, %v640_v45  ;;  %v674_v1 = vmul.f32 %v658_v53, %v658_v53  ;;  %v761_v32 = vsub.f32 %v1667_v16, %v730_v54 }
 0x2ed   :  { %v785_v43 = vadd.f32 %v784_v33, %v770_v27  ;;  %v661_v6 = vsub.f32 %v1709_v30, %v641_v63  ;;  %v675_v8 = vmul.f32 %v659_v58, %v659_v58  ;;  %v776_v11 = vand.u32 2147483647, %v760_v62  ;;  %v647_v33 = vld [vmem:[%s1802_s1 + $0x60] sm:$0xff] }
 0x2ee   :  { %v688_v2 = vadd.f32 %v687_v60, %v673_v59  ;;  %v662_v15 = vsub.f32 %v1709_v30, %v642_v4  ;;  %v676_v41 = vmul.f32 %v660_v21, %v660_v21  ;;  %v777_v17 = vand.u32 2147483647, %v761_v32 }
 0x2ef   :  { %v786_v52 = vadd.f32 %v785_v43, %v771_v42  ;;  %v663_v20 = vsub.f32 %v1709_v30, %v643_v10  ;;  %v677_v29 = vmul.f32 %v661_v6, %v661_v6  ;;  %v664_v35 = vsub.f32 %v1709_v30, %v644_v18  ;;  %v649_v43 = vld [vmem:[%s1802_s1 + $0x70] sm:$0xff] }
 0x2f0   :  { %v689_v9 = vadd.f32 %v688_v2, %v674_v1  ;;  %v678_v23 = vmul.f32 %v662_v15, %v662_v15  ;;  %v665_v27 = vsub.f32 %v1709_v30, %v645_v22  ;;  %v666_v36 = vsub.f32 %v1709_v30, %v646_v25 }
 0x2f1   :  { %v787_v57 = vadd.f32 %v786_v52, %v772_v51  ;;  %v679_v28 = vmul.f32 %v663_v20, %v663_v20  ;;  %v680_v37 = vmul.f32 %v664_v35, %v664_v35  ;;  %v667_v7 = vsub.f32 %v1709_v30, %v647_v33 }
 0x2f2   :  { %v690_v16 = vadd.f32 %v689_v9, %v675_v8  ;;  %v681_v42 = vmul.f32 %v665_v27, %v665_v27  ;;  %v668_v44 = vsub.f32 %v1709_v30, %v648_v40  ;;  %v682_v46 = vmul.f32 %v666_v36, %v666_v36 }
 0x2f3   :  { %v788_v26 = vadd.f32 %v787_v57, %v773_v56  ;;  %v669_v39 = vsub.f32 %v1709_v30, %v649_v43  ;;  %v683_v49 = vmul.f32 %v667_v7, %v667_v7  ;;  %v670_v52 = vsub.f32 %v1709_v30, %v650_v48 }
 0x2f4   :  { %v691_v12 = vadd.f32 %v690_v16, %v676_v41  ;;  %v684_v53 = vmul.f32 %v668_v44, %v668_v44  ;;  %v835_v45 = vsub.f32 %v1655_v0, %v1702_v61 }
 0x2f5   :  { %v789_v5 = vadd.f32 %v788_v26, %v774_v50  ;;  %v685_v55 = vmul.f32 %v669_v39, %v669_v39  ;;  %v686_v57 = vmul.f32 %v670_v52, %v670_v52 }
 0x2f6   :  { %v692_v24 = vadd.f32 %v691_v12, %v677_v29  ;;  %v836_v60 = vand.u32 2147483647, %v835_v45 }
 0x2f7   :  { %v790_v13 = vadd.f32 %v789_v5, %v775_v3 }
 0x2f8   :  { %v693_v31 = vadd.f32 %v692_v24, %v678_v23  ;;  %v837_v62 = vsel %vm807_vm2, %v836_v60, 0.0 }
 0x2f9   :  { %v791_v19 = vadd.f32 %v790_v13, %v776_v11 }
 0x2fa   :  { %v694_v38 = vadd.f32 %v693_v31, %v679_v28 }
 0x2fb   :  { %v792_v14 = vadd.f32 %v791_v19, %v777_v17 }
 0x2fc   :  { %v695_v34 = vadd.f32 %v694_v38, %v680_v37 }
 0x2fd   :  { %793 = vadd.xlane.f32.xlu0 %v792_v14 }
 0x2fe   :  { %v696_v47 = vadd.f32 %v695_v34, %v681_v42 }
 0x300   :  { %v697_v51 = vadd.f32 %v696_v47, %v682_v46 }
 0x302   :  { %v698_v54 = vadd.f32 %v697_v51, %v683_v49 }
 0x304   :  { %v699_v56 = vadd.f32 %v698_v54, %v684_v53 }
 0x306   :  { %v700_v58 = vadd.f32 %v699_v56, %v685_v55 }
 0x308   :  { %v701_v59 = vadd.f32 %v700_v58, %v686_v57 }
 0x30a   :  { %702 = vadd.xlane.f32.xlu0 %v701_v59 }
 0x30e   :  { %838 = vadd.xlane.f32.xlu0 %v837_v62 }
 0x368   :  { %v810_v50 = vpop.xlane.xlu1 %809 }
 0x369   :  { %v811_v30 = vrot.slane %v810_v50, 4 }
 0x36b   :  { %v812_v4 = vadd.f32 %v811_v30, %v810_v50 }
 0x36c   :  { %v826_v63 = vpop.xlane.xlu1 %825 }
 0x36d   :  { %v827_v2 = vrot.slane %v826_v63, 4  ;;  %v813_v8 = vrot.slane %v812_v4, 2 }
 0x36f   :  { %v828_v5 = vadd.f32 %v827_v2, %v826_v63  ;;  %v814_v18 = vadd.f32 %v813_v8, %v812_v4 }
 0x371   :  { %v829_v11 = vrot.slane %v828_v5, 2  ;;  %v815_v23 = vrot.slane %v814_v18, 1 }
 0x373   :  { %v830_v19 = vadd.f32 %v829_v11, %v828_v5  ;;  %v816_v33 = vadd.f32 %v815_v23, %v814_v18 }
 0x374   :  { %v852_v1 = vpop.xlane.xlu1 %851 }
 0x375   :  { %v853_v32 = vrot.slane %v852_v1, 4  ;;  %v831_v24 = vrot.slane %v830_v19, 1 }
 0x377   :  { %v854_v0 = vadd.f32 %v853_v32, %v852_v1  ;;  %v832_v37 = vadd.f32 %v831_v24, %v830_v19 }
 0x379   :  { %v855_v13 = vrot.slane %v854_v0, 2 }
 0x37b   :  { %v856_v12 = vadd.f32 %v855_v13, %v854_v0 }
 0x37d   :  { %v857_v31 = vrot.slane %v856_v12, 1 }
 0x37f   :  { %v858_v40 = vadd.f32 %v857_v31, %v856_v12 }
 0x386   :  { %v794_v26 = vpop.xlane.xlu0 %793 }
 0x387   :  { %v795_v21 = vrot.slane %v794_v26, 4 }
 0x389   :  { %v796_v3 = vadd.f32 %v795_v21, %v794_v26 }
 0x38b   :  { %v797_v61 = vrot.slane %v796_v3, 2 }
 0x38d   :  { %v798_v41 = vadd.f32 %v797_v61, %v796_v3 }
 0x38f   :  { %v799_v22 = vrot.slane %v798_v41, 1 }
 0x391   :  { %v800_v28 = vadd.f32 %v799_v22, %v798_v41 }
 0x393   :  { %v703_v6 = vpop.xlane.xlu0 %702 }
 0x394   :  { %v704_v9 = vrot.slane %v703_v6, 4 }
 0x396   :  { %v705_v10 = vadd.f32 %v704_v9, %v703_v6 }
 0x397   :  { %v839_v15 = vpop.xlane.xlu0 %838 }
 0x398   :  { %v706_v16 = vrot.slane %v705_v10, 2  ;;  %v840_v17 = vrot.slane %v839_v15, 4 }
 0x39a   :  { %v841_v20 = vadd.f32 %v840_v17, %v839_v15  ;;  %v707_v29 = vadd.f32 %v706_v16, %v705_v10 }
 0x39c   :  { %v842_v14 = vrot.slane %v841_v20, 2  ;;  %v708_v35 = vrot.slane %v707_v29, 1 }
 0x39e   :  { %v843_v25 = vadd.f32 %v842_v14, %v841_v20  ;;  %v709_v27 = vadd.f32 %v708_v35, %v707_v29 }
 0x3a0   :  { %1033 = vpush %v709_v27  ;;  %v844_v36 = vrot.slane %v843_v25, 1 }
 0x3a1   :  { %1035 = vpush %v800_v28 }
 0x3a2   :  { %1037 = vpush %v816_v33  ;;  %v845_v38 = vadd.f32 %v844_v36, %v843_v25 }
 0x3a3   :  { %1039 = vpush %v832_v37 }
 0x3a4   :  { %1041 = vpush %v845_v38 }
 0x3a5   :  { %1043 = vpush %v858_v40 }
 0x3d1   :  { %s1034_s1 = spop %1033 }
 0x3d2   :  { %s861_s15 = smul.f32 3.0517578e-05, %s1034_s1  ;;  %s1036_s16 = spop %1035 }
 0x3d3   :  { %s1038_s17 = spop %1037 }
 0x3d4   :  { %863 = sst [smem:[#allocation2]] %s861_s15  ;;  %s1040_s19 = spop %1039 }
 0x3d5   :  { %s818_s18 = ssub.f32 %s1036_s16, %s1038_s17  ;;  %s1042_s20 = spop %1041 }
 0x3d6   :  { %s1044_s23 = spop %1043 }
 0x3d7   :  { %s834_s21 = ssub.f32 %s818_s18, %s1040_s19 }
 0x3d9   :  { %s847_s22 = sadd.f32 %s1042_s20, %s834_s21 }
 0x3db   :  { %s860_s26 = sadd.f32 %s1044_s23, %s847_s22 }
 0x3dd   :  { %s864_s2 = smul.f32 3.0757874e-05, %s860_s26 }
 0x3df   :  { %866 = sst [smem:[#allocation2 + $0x1]] %s864_s2 }
 0x3e0   :  { %1158 = shalt.err (!%p1155_p4)
}
 0x3e1   :  { %s1164_s27 = smov [#allocation2]  }
 0x3e2   :  { %876 = dma.smem_to_vmem %s1164_s27, 16, %s874_s25, [#allocation3]  }
 0x3e3   :  { %1159 = dma.done.wait [#allocation3], 16  }
 0x3e4   :  { %1160 = vsyncadd [#allocation3], 4294967280 }
 0x3e5   :  { %880 = sfence }
 0x3e6   :  { %881 = vsyncpa [#allocation3], 1 }

</bundles_post_ra>
